<compile_context>
chip_gen: v5e
topology: v5e:2x2
jax: 0.10.0
libtpu: 0.0.40
codegen_flags: <defaults>
</compile_context>

<pallas_src>
import jax
import jax.numpy as jnp
from jax import lax
from jax.experimental import pallas as pl
from jax.experimental.pallas import tpu as pltpu

_LANES = 128                     # lane width of the 2-D streaming view
_P_SPLIT = 2                     # outer "parallel" grid axis (2 TCs on v7x)
_TILE_BYTES = 2 * 1024 * 1024    # per-pipeline-buffer target (2 MiB)
_VMEM_LIMIT = 32 * 1024 * 1024   # raised scoped-VMEM limit (needed on v5e)


def _round_up(x, m):
    return -(-x // m) * m


def _make_kernel(total_rows, tile_rows, k_blocks, need_gate):
    """Partial-sum kernel: per grid-p slice, accumulate three (8, 128)
    per-sublane/lane partials resident in VMEM across the k axis:
        sum((p - t)^2), sum(p), sum(p^2)."""

    def accumulate(pred_ref, true_ref, d2_ref, s_ref, ss_ref, valid_rows):
        p = pred_ref[...].astype(jnp.float32)
        t = true_ref[...].astype(jnp.float32)
        d = p - t
        d2 = d * d
        pp = p * p
        pv = p
        if valid_rows is not None:
            # Ragged tail block: rows >= valid_rows hold unspecified data
            # (partial boundary DMA) -> select them to zero before summing.
            rows = lax.broadcasted_iota(jnp.int32, p.shape, 0)
            keep = rows < valid_rows
            zero = jnp.zeros_like(p)
            d2 = jnp.where(keep, d2, zero)
            pv = jnp.where(keep, p, zero)
            pp = jnp.where(keep, pp, zero)
        r8 = tile_rows // 8
        c = p.shape[-1]
        # (tr, 128) -> (tr//8, 8, 128) is a layout-preserving split of the
        # sublane dim; the axis-0 sum is pure vreg adds (VPU), keeping the
        # per-step epilogue off the XLU and the accumulator store unmasked.
        d2_ref[...] += d2.reshape(r8, 8, c).sum(axis=0)
        s_ref[...] += pv.reshape(r8, 8, c).sum(axis=0)
        ss_ref[...] += pp.reshape(r8, 8, c).sum(axis=0)

    def kernel(pred_ref, true_ref, d2_ref, s_ref, ss_ref):
        k = pl.program_id(1)

        @pl.when(k == 0)
        def _init():
            d2_ref[...] = jnp.zeros_like(d2_ref)
            s_ref[...] = jnp.zeros_like(s_ref)
            ss_ref[...] = jnp.zeros_like(ss_ref)

        if not need_gate:
            # Fast path: every block is full and in range (shapes divide).
            accumulate(pred_ref, true_ref, d2_ref, s_ref, ss_ref, None)
        else:
            b = pl.program_id(0) * k_blocks + k      # raw (unclamped) block id
            valid = total_rows - b * tile_rows       # rows of this block in range

            @pl.when(valid >= tile_rows)             # full block: no masking
            def _full():
                accumulate(pred_ref, true_ref, d2_ref, s_ref, ss_ref, None)

            @pl.when(jnp.logical_and(valid > 0, valid < tile_rows))
            def _partial():                          # ragged tail block
                accumulate(pred_ref, true_ref, d2_ref, s_ref, ss_ref, valid)
            # valid <= 0: clamped out-of-range step -> contributes nothing.

    return kernel


def adaptive_sharpe_ratio_loss(pred_returns, true_returns,
                               risk_free_rate=0.0,
                               lambda_sharpe=0.5,
                               lambda_mse=0.5,
                               tile_rows=None):
    assert pred_returns.shape == true_returns.shape
    assert pred_returns.dtype == true_returns.dtype
    n_elems = int(pred_returns.size)
    assert n_elems > 1, "need at least 2 elements for an unbiased std"

    c = _LANES
    itemsize = jnp.dtype(pred_returns.dtype).itemsize
    sublane = max(8, 32 // max(itemsize, 1))   # 8 (f32), 16 (bf16/f16), 32 (i8)

    rows = -(-n_elems // c)                    # ceil(N / 128)

    def to_2d(x):
        flat = jnp.ravel(x)                    # free bitcast for contiguous input
        pad = rows * c - n_elems
        if pad:
            # Only when N % 128 != 0: pads < 128 zeros (zeros contribute 0 to
            # every accumulated sum, and the finalize divides by the true N).
            flat = jnp.pad(flat, (0, pad))
        return flat.reshape(rows, c)

    pred2d = to_2d(pred_returns)
    true2d = to_2d(true_returns)

    if tile_rows is None:
        tr_max = max(sublane,
                     (_TILE_BYTES // (c * itemsize)) // sublane * sublane)
        tr = min(tr_max, _round_up(rows, sublane))
    else:
        assert tile_rows > 0 and tile_rows % sublane == 0, (
            "tile_rows must be a positive multiple of %d for dtype %s"
            % (sublane, pred_returns.dtype))
        tr = tile_rows

    nb = -(-rows // tr)                        # total row-blocks (no row padding)
    p_split = _P_SPLIT if nb >= _P_SPLIT else 1
    kb = -(-nb // p_split)                     # row-blocks handled per p slice
    need_gate = (rows % tr != 0) or (p_split * kb != nb)

    # Contiguous block assignment per p slice; clamp keeps the (rare) trailing
    # out-of-range steps pointing at a valid block (their contribution is
    # skipped in-kernel).
    in_spec = pl.BlockSpec(
        (tr, c), lambda p, k: (jnp.minimum(p * kb + k, nb - 1), 0))
    out_spec = pl.BlockSpec((None, 8, c), lambda p, k: (p, 0, 0))
    part = jax.ShapeDtypeStruct((p_split, 8, c), jnp.float32)

    d2_part, s_part, ss_part = pl.pallas_call(
        _make_kernel(rows, tr, kb, need_gate),
        grid=(p_split, kb),
        in_specs=[in_spec, in_spec],
        out_specs=[out_spec, out_spec, out_spec],
        out_shape=[part, part, part],
        compiler_params=pltpu.CompilerParams(
            dimension_semantics=("parallel", "arbitrary"),
            vmem_limit_bytes=_VMEM_LIMIT),
    )(pred2d, true2d)

    # Final scalar combine on the tiny (p_split, 8, 128) partials.
    n = jnp.float32(n_elems)
    sum_d2 = jnp.sum(d2_part)
    sum_p = jnp.sum(s_part)
    sum_pp = jnp.sum(ss_part)

    mse = sum_d2 / n
    mean_p = sum_p / n
    mean_return = mean_p - jnp.float32(risk_free_rate)
    # torch.std default is UNBIASED (N-1).  Clamp before sqrt: the one-pass
    # E[x^2] - E[x]^2 form can go slightly negative from f32 cancellation.
    var = jnp.maximum((sum_pp - n * mean_p * mean_p) / (n - 1.0), 0.0)
    std_return = jnp.sqrt(var) + 1e-6
    sharpe_ratio = mean_return / std_return
    sharpe_loss = -sharpe_ratio
    return lambda_mse * mse + lambda_sharpe * sharpe_loss


def _reference(pred, true, risk_free_rate=0.0, lambda_sharpe=0.5, lambda_mse=0.5):
    p = pred.astype(jnp.float32)
    t = true.astype(jnp.float32)
    mse = jnp.mean((p - t) ** 2)
    mean_return = jnp.mean(p) - risk_free_rate
    std_return = jnp.std(p, ddof=1) + 1e-6   # torch.std default: unbiased
    sharpe = mean_return / std_return
    return lambda_mse * mse + lambda_sharpe * (-sharpe)


if __name__ == "__main__":
    key = jax.random.PRNGKey(0)

    # (shape, dtype, risk_free_rate, lambda_sharpe, lambda_mse, tile_rows)
    tests = [
        ((8, 128), jnp.float32, 0.0, 0.5, 0.5, None),     # single full block
        ((64, 1024), jnp.float32, 0.0, 0.5, 0.5, 64),     # divisible fast path, 2x4 grid
        ((33, 1024), jnp.float32, 0.0, 0.5, 0.5, 64),     # ragged row-blocks -> in-kernel mask
        ((4, 50), jnp.float32, 0.001, 0.7, 0.3, None),    # N % 128 != 0 -> tiny tail pad
        ((16, 129), jnp.bfloat16, 0.0, 0.5, 0.5, None),   # bf16 path (16-row sublane tiles)
    ]
    for shape, dtype, rf, ls, lm, trows in tests:
        key, k1, k2 = jax.random.split(key, 3)
        pred = (0.01 * jax.random.normal(k1, shape, dtype=jnp.float32)).astype(dtype)
        true = (0.01 * jax.random.normal(k2, shape, dtype=jnp.float32)).astype(dtype)

        loss = adaptive_sharpe_ratio_loss(
            pred, true, risk_free_rate=rf, lambda_sharpe=ls, lambda_mse=lm,
            tile_rows=trows)
        loss = jax.block_until_ready(loss)

        ref = _reference(pred, true, risk_free_rate=rf,
                         lambda_sharpe=ls, lambda_mse=lm)
        assert bool(jnp.isfinite(loss)), (shape, loss)
        assert jnp.allclose(loss, ref, rtol=1e-4, atol=1e-6), (
            shape, float(loss), float(ref))

    print("KERNEL_OK")
</pallas_src>

<mosaic_0001>
module attributes {stable_mosaic.version = 11 : i64} {
  func.func @kernel(%arg0: i32, %arg1: i32, %arg2: memref<8x128xf32, #tpu.memory_space<vmem>>, %arg3: memref<8x128xf32, #tpu.memory_space<vmem>>, %arg4: memref<1x8x128xf32, #tpu.memory_space<vmem>>, %arg5: memref<1x8x128xf32, #tpu.memory_space<vmem>>, %arg6: memref<1x8x128xf32, #tpu.memory_space<vmem>>) attributes {dimension_semantics = [#tpu.dimension_semantics<parallel>, #tpu.dimension_semantics<arbitrary>], iteration_bounds = array<i64: 1, 1>, scalar_prefetch = 0 : i64, scratch_operands = 0 : i64, tpu.core_type = #tpu.core_type<tc>, window_params = [{transform_indices = @transform_0, window_bounds = array<i64: 8, 128>}, {transform_indices = @transform_1, window_bounds = array<i64: 8, 128>}, {transform_indices = @transform_2, window_bounds = array<i64: 1, 8, 128>}, {transform_indices = @transform_3, window_bounds = array<i64: 1, 8, 128>}, {transform_indices = @transform_4, window_bounds = array<i64: 1, 8, 128>}]} {
    %c0_i32 = arith.constant 0 : i32
    %0 = arith.cmpi eq, %arg1, %c0_i32 : i32
    %1 = arith.extui %0 : i1 to i32
    %c0_i32_0 = arith.constant 0 : i32
    %2 = arith.cmpi ne, %1, %c0_i32_0 : i32
    scf.if %2 {
      %cst_24 = arith.constant 0.000000e+00 : f32
      %32 = vector.broadcast %cst_24 : f32 to vector<8x128xf32>
      %c0_25 = arith.constant 0 : index
      %c0_26 = arith.constant 0 : index
      %c0_27 = arith.constant 0 : index
      %33 = vector.load %arg4[%c0_25, %c0_26, %c0_27] : memref<1x8x128xf32, #tpu.memory_space<vmem>>, vector<1x8x128xf32>
      %34 = vector.shape_cast %33 : vector<1x8x128xf32> to vector<8x128xf32>
      %35 = vector.shape_cast %32 : vector<8x128xf32> to vector<1x8x128xf32>
      tpu.vector_store %arg4[%c0_25, %c0_26, %c0_27], %35 {strides = array<i32>} : memref<1x8x128xf32, #tpu.memory_space<vmem>>, vector<1x8x128xf32>,
      %cst_28 = arith.constant 0.000000e+00 : f32
      %36 = vector.broadcast %cst_28 : f32 to vector<8x128xf32>
      %c0_29 = arith.constant 0 : index
      %c0_30 = arith.constant 0 : index
      %c0_31 = arith.constant 0 : index
      %37 = vector.load %arg5[%c0_29, %c0_30, %c0_31] : memref<1x8x128xf32, #tpu.memory_space<vmem>>, vector<1x8x128xf32>
      %38 = vector.shape_cast %37 : vector<1x8x128xf32> to vector<8x128xf32>
      %39 = vector.shape_cast %36 : vector<8x128xf32> to vector<1x8x128xf32>
      tpu.vector_store %arg5[%c0_29, %c0_30, %c0_31], %39 {strides = array<i32>} : memref<1x8x128xf32, #tpu.memory_space<vmem>>, vector<1x8x128xf32>,
      %cst_32 = arith.constant 0.000000e+00 : f32
      %40 = vector.broadcast %cst_32 : f32 to vector<8x128xf32>
      %c0_33 = arith.constant 0 : index
      %c0_34 = arith.constant 0 : index
      %c0_35 = arith.constant 0 : index
      %41 = vector.load %arg6[%c0_33, %c0_34, %c0_35] : memref<1x8x128xf32, #tpu.memory_space<vmem>>, vector<1x8x128xf32>
      %42 = vector.shape_cast %41 : vector<1x8x128xf32> to vector<8x128xf32>
      %43 = vector.shape_cast %40 : vector<8x128xf32> to vector<1x8x128xf32>
      tpu.vector_store %arg6[%c0_33, %c0_34, %c0_35], %43 {strides = array<i32>} : memref<1x8x128xf32, #tpu.memory_space<vmem>>, vector<1x8x128xf32>,
    } else {
    }
    %c0 = arith.constant 0 : index
    %c0_1 = arith.constant 0 : index
    %3 = vector.load %arg2[%c0, %c0_1] : memref<8x128xf32, #tpu.memory_space<vmem>>, vector<8x128xf32>
    %c0_2 = arith.constant 0 : index
    %c0_3 = arith.constant 0 : index
    %4 = vector.load %arg3[%c0_2, %c0_3] : memref<8x128xf32, #tpu.memory_space<vmem>>, vector<8x128xf32>
    %5 = arith.subf %3, %4 : vector<8x128xf32>
    %6 = arith.mulf %5, %5 : vector<8x128xf32>
    %7 = arith.mulf %3, %3 : vector<8x128xf32>
    %c0_4 = arith.constant 0 : index
    %c0_5 = arith.constant 0 : index
    %c0_6 = arith.constant 0 : index
    %8 = vector.load %arg4[%c0_4, %c0_5, %c0_6] : memref<1x8x128xf32, #tpu.memory_space<vmem>>, vector<1x8x128xf32>
    %9 = vector.shape_cast %8 : vector<1x8x128xf32> to vector<8x128xf32>
    %10 = vector.shape_cast %6 : vector<8x128xf32> to vector<1x8x128xf32>
    %cst = arith.constant dense<0.000000e+00> : vector<8x128xf32>
    %11 = vector.multi_reduction <add>, %10, %cst [0] : vector<1x8x128xf32> to vector<8x128xf32>
    %12 = arith.addf %9, %11 : vector<8x128xf32>
    %c0_7 = arith.constant 0 : index
    %c0_8 = arith.constant 0 : index
    %c0_9 = arith.constant 0 : index
    %13 = vector.load %arg4[%c0_7, %c0_8, %c0_9] : memref<1x8x128xf32, #tpu.memory_space<vmem>>, vector<1x8x128xf32>
    %14 = vector.shape_cast %13 : vector<1x8x128xf32> to vector<8x128xf32>
    %15 = vector.shape_cast %12 : vector<8x128xf32> to vector<1x8x128xf32>
    tpu.vector_store %arg4[%c0_7, %c0_8, %c0_9], %15 {strides = array<i32>} : memref<1x8x128xf32, #tpu.memory_space<vmem>>, vector<1x8x128xf32>,
    %c0_10 = arith.constant 0 : index
    %c0_11 = arith.constant 0 : index
    %c0_12 = arith.constant 0 : index
    %16 = vector.load %arg5[%c0_10, %c0_11, %c0_12] : memref<1x8x128xf32, #tpu.memory_space<vmem>>, vector<1x8x128xf32>
    %17 = vector.shape_cast %16 : vector<1x8x128xf32> to vector<8x128xf32>
    %18 = vector.shape_cast %3 : vector<8x128xf32> to vector<1x8x128xf32>
    %cst_13 = arith.constant dense<0.000000e+00> : vector<8x128xf32>
    %19 = vector.multi_reduction <add>, %18, %cst_13 [0] : vector<1x8x128xf32> to vector<8x128xf32>
    %20 = arith.addf %17, %19 : vector<8x128xf32>
    %c0_14 = arith.constant 0 : index
    %c0_15 = arith.constant 0 : index
    %c0_16 = arith.constant 0 : index
    %21 = vector.load %arg5[%c0_14, %c0_15, %c0_16] : memref<1x8x128xf32, #tpu.memory_space<vmem>>, vector<1x8x128xf32>
    %22 = vector.shape_cast %21 : vector<1x8x128xf32> to vector<8x128xf32>
    %23 = vector.shape_cast %20 : vector<8x128xf32> to vector<1x8x128xf32>
    tpu.vector_store %arg5[%c0_14, %c0_15, %c0_16], %23 {strides = array<i32>} : memref<1x8x128xf32, #tpu.memory_space<vmem>>, vector<1x8x128xf32>,
    %c0_17 = arith.constant 0 : index
    %c0_18 = arith.constant 0 : index
    %c0_19 = arith.constant 0 : index
    %24 = vector.load %arg6[%c0_17, %c0_18, %c0_19] : memref<1x8x128xf32, #tpu.memory_space<vmem>>, vector<1x8x128xf32>
    %25 = vector.shape_cast %24 : vector<1x8x128xf32> to vector<8x128xf32>
    %26 = vector.shape_cast %7 : vector<8x128xf32> to vector<1x8x128xf32>
    %cst_20 = arith.constant dense<0.000000e+00> : vector<8x128xf32>
    %27 = vector.multi_reduction <add>, %26, %cst_20 [0] : vector<1x8x128xf32> to vector<8x128xf32>
    %28 = arith.addf %25, %27 : vector<8x128xf32>
    %c0_21 = arith.constant 0 : index
    %c0_22 = arith.constant 0 : index
    %c0_23 = arith.constant 0 : index
    %29 = vector.load %arg6[%c0_21, %c0_22, %c0_23] : memref<1x8x128xf32, #tpu.memory_space<vmem>>, vector<1x8x128xf32>
    %30 = vector.shape_cast %29 : vector<1x8x128xf32> to vector<8x128xf32>
    %31 = vector.shape_cast %28 : vector<8x128xf32> to vector<1x8x128xf32>
    tpu.vector_store %arg6[%c0_21, %c0_22, %c0_23], %31 {strides = array<i32>} : memref<1x8x128xf32, #tpu.memory_space<vmem>>, vector<1x8x128xf32>,
    return
  }
  func.func @transform_0(%arg0: i32, %arg1: i32) -> (i32, i32) {
    %c1_i32 = arith.constant 1 : i32
    %0 = arith.muli %arg0, %c1_i32 : i32
    %1 = arith.addi %0, %arg1 : i32
    %c0_i32 = arith.constant 0 : i32
    %2 = arith.minsi %1, %c0_i32 : i32
    %c0_i32_0 = arith.constant 0 : i32
    %c0_i32_1 = arith.constant 0 : i32
    return %2, %c0_i32_0 : i32, i32
  }
  func.func @transform_1(%arg0: i32, %arg1: i32) -> (i32, i32) {
    %c1_i32 = arith.constant 1 : i32
    %0 = arith.muli %arg0, %c1_i32 : i32
    %1 = arith.addi %0, %arg1 : i32
    %c0_i32 = arith.constant 0 : i32
    %2 = arith.minsi %1, %c0_i32 : i32
    %c0_i32_0 = arith.constant 0 : i32
    %c0_i32_1 = arith.constant 0 : i32
    return %2, %c0_i32_0 : i32, i32
  }
  func.func @transform_2(%arg0: i32, %arg1: i32) -> (i32, i32, i32) {
    %c0_i32 = arith.constant 0 : i32
    %c0_i32_0 = arith.constant 0 : i32
    %c0_i32_1 = arith.constant 0 : i32
    return %arg0, %c0_i32, %c0_i32_0 : i32, i32, i32
  }
  func.func @transform_3(%arg0: i32, %arg1: i32) -> (i32, i32, i32) {
    %c0_i32 = arith.constant 0 : i32
    %c0_i32_0 = arith.constant 0 : i32
    %c0_i32_1 = arith.constant 0 : i32
    return %arg0, %c0_i32, %c0_i32_0 : i32, i32, i32
  }
  func.func @transform_4(%arg0: i32, %arg1: i32) -> (i32, i32, i32) {
    %c0_i32 = arith.constant 0 : i32
    %c0_i32_0 = arith.constant 0 : i32
    %c0_i32_1 = arith.constant 0 : i32
    return %arg0, %c0_i32, %c0_i32_0 : i32, i32, i32
  }
}

</mosaic_0001>

<bundles_post_ra>
// kernel: tpu_custom_call.1
= control target key start
LH: loop header
LB: loop body
LE: loop exit
PB: predicated region body
PF: predicated region fallthrough
CT: control target
= control target key end

     0   :  { %10 = vsyncpa [#allocation3], 0  ;;  %s316_s0 = inlined_call_operand.hbm [shape: f32[8,128], index: 0, kind: input, shape index: {}]   ;;  %s317_s1 = inlined_call_operand.hbm [shape: f32[8,128], index: 1, kind: input, shape index: {}]   ;;  %s318_s2 = inlined_call_operand.hbm [shape: f32[1,8,128], index: 2, kind: output, shape index: {0}]   ;;  %s319_s3 = inlined_call_operand.hbm [shape: f32[1,8,128], index: 3, kind: output, shape index: {1}]   ;;  %s320_s4 = inlined_call_operand.hbm [shape: f32[1,8,128], index: 4, kind: output, shape index: {2}]  }
   0x1   :  { %11 = vsyncpa [#allocation6], 0 }
   0x2   :  { %12 = vsyncpa [#allocation4], 0 }
   0x3   :  { %13 = vsyncpa [#allocation9], 0  ;;  %s24_s17 = sshll.u32 %s316_s0, 4  ;;  %s271_s18 = smov [#allocation2]   ;;  %s25_s17 = int_to_ptr.hbm [resolvable:$true] %s24_s17 }
   0x4   :  { %s26_s19 = sshll.u32 %s271_s18, 4  ;;  %s40_s22 = sshll.u32 %s317_s1, 4  ;;  %s27_s19 = int_to_ptr.vmem [resolvable:$true] %s26_s19  ;;  %s41_s22 = int_to_ptr.hbm [resolvable:$true] %s40_s22 }
   0x5   :  { %29 = dma.hbm_to_vmem [thread:$0]  %s25_s17, 128, %s27_s19, [#allocation3]  }
   0x6   :  { %s272_s23 = smov [#allocation5]  }
   0x7   :  { %s42_s24 = sshll.u32 %s272_s23, 4  ;;  %s43_s24 = int_to_ptr.vmem [resolvable:$true] %s42_s24 }
   0x8   :  { %45 = dma.hbm_to_vmem [thread:$0]  %s41_s22, 128, %s43_s24, [#allocation6]  }
   0x9   :  { %263 = dma.done.wait [#allocation3], 128  }
   0xa   :  { %264 = vsyncadd [#allocation3], 4294967168 }
   0xb   :  { %265 = dma.done.wait [#allocation6], 128  }
   0xc   :  { %266 = vsyncadd [#allocation6], 4294967168  ;;  %s102_s26 = sshll.u32 %s319_s3, 4  ;;  %s273_s27 = smov [#allocation8]   ;;  %v67_v0 = vld [vmem:[#allocation2] sm:$0xff]  ;;  %v68_v1 = vld [vmem:[#allocation5] sm:$0xff]  ;;  %s103_s26 = int_to_ptr.hbm [resolvable:$true] %s102_s26 }
   0xd   :  { %s100_s28 = sshll.u32 %s273_s27, 4  ;;  %s274_s29 = smov [#allocation10]   ;;  %v69_v2 = vsub.f32 %v67_v0, %v68_v1  ;;  %v71_v3 = vmul.f32 %v67_v0, %v67_v0  ;;  %79 = vst [vmem:[#allocation8] sm:$0xff] %v67_v0  ;;  %s101_s28 = int_to_ptr.vmem [resolvable:$true] %s100_s28 }
   0xe   :  { %s111_s1 = sshll.u32 %s274_s29, 4  ;;  %s113_s6 = sshll.u32 %s320_s4, 4  ;;  %s112_s1 = int_to_ptr.vmem [resolvable:$true] %s111_s1  ;;  %s114_s6 = int_to_ptr.hbm [resolvable:$true] %s113_s6 }
   0xf   :  { %s275_s7 = smov [#allocation7]   ;;  %s91_s3 = sshll.u32 %s318_s2, 4  ;;  %v70_v4 = vmul.f32 %v69_v2, %v69_v2  ;;  %83 = vst [vmem:[#allocation10] sm:$0xff] %v71_v3  ;;  %s92_s3 = int_to_ptr.hbm [resolvable:$true] %s91_s3 }
  0x10   :  { %s89_s8 = sshll.u32 %s275_s7, 4  ;;  %s90_s8 = int_to_ptr.vmem [resolvable:$true] %s89_s8 }
  0x11   :  { %105 = dma.vmem_to_hbm [thread:$0]  %s101_s28, 128, %s103_s26, [#allocation9]   ;;  %75 = vst [vmem:[#allocation7] sm:$0xff] %v70_v4 }
  0x12   :  { %116 = dma.vmem_to_hbm [thread:$0]  %s112_s1, 128, %s114_s6, [#allocation9]  }
  0x13   :  { %94 = dma.vmem_to_hbm [thread:$0]  %s90_s8, 128, %s92_s3, [#allocation4]  }
  0x14   :  { %267 = dma.done.wait [#allocation4], 128  }
  0x15   :  { %268 = vsyncadd [#allocation4], 4294967168 }
  0x16   :  { %269 = dma.done.wait [#allocation9], 256  }
  0x17   :  { %270 = vsyncadd [#allocation9], 4294967040 }
  0x18   :  { %129 = vsyncpa [#allocation3], 1 }
  0x19   :  { %130 = vsyncpa [#allocation6], 1 }
  0x1a   :  { %131 = vsyncpa [#allocation4], 1 }
  0x1b   :  { %132 = vsyncpa [#allocation9], 1 }

</bundles_post_ra>
